<compile_context>
chip_gen: v5e
topology: v5e:2x2
jax: 0.10.0
libtpu: 0.0.40
codegen_flags: <defaults>
</compile_context>

<pallas_src>
from functools import partial

import jax
import jax.numpy as jnp
from jax.experimental import pallas as pl
from jax.experimental.pallas import tpu as pltpu


# ----------------------------- helpers (glue) -------------------------------

def fold_conv_bn(w, b, bn, eps=1e-5):
    """Fold eval-mode BatchNorm into a 1x1x1 conv.  w: (Cin, Cout), b: (Cout,)."""
    s = bn["gamma"] / jnp.sqrt(bn["var"] + eps)
    w_f = w * s[None, :]
    b_f = (b - bn["mean"]) * s + bn["beta"]
    return w_f, b_f


def _linear_coeffs(in_size, out_size):
    # PyTorch F.interpolate(..., mode='*linear', align_corners=False) indexing.
    scale = in_size / out_size
    dst = jnp.arange(out_size, dtype=jnp.float32)
    src = jnp.maximum((dst + 0.5) * scale - 0.5, 0.0)
    i0 = jnp.clip(jnp.floor(src).astype(jnp.int32), 0, in_size - 1)
    i1 = jnp.minimum(i0 + 1, in_size - 1)
    w1 = src - i0.astype(jnp.float32)
    return i0, i1, 1.0 - w1, w1


def _axis_matrix(in_size, out_size):
    """1-D linear-interp operator U (out, in); each row is convex (sums to 1)."""
    i0, i1, w0, w1 = _linear_coeffs(in_size, out_size)
    rows = jnp.arange(out_size)
    u = jnp.zeros((out_size, in_size), jnp.float32)
    u = u.at[rows, i0].add(w0)
    u = u.at[rows, i1].add(w1)
    return u


def _resize_axis(x, axis, out_size):
    in_size = x.shape[axis]
    if in_size == out_size:
        return x  # exact identity under align_corners=False with scale 1
    i0, i1, w0, w1 = _linear_coeffs(in_size, out_size)
    shape = [1] * x.ndim
    shape[axis] = out_size
    return (jnp.take(x, i0, axis=axis) * w0.reshape(shape)
            + jnp.take(x, i1, axis=axis) * w1.reshape(shape))


def trilinear_resize(x, out_dhw):
    """x: (N, D, H, W, C) -> (N, out_D, out_H, out_W, C); reference-path only."""
    for axis, size in zip((1, 2, 3), out_dhw):
        x = _resize_axis(x, axis, size)
    return x


# ------------------------- chip-aware tiling policy --------------------------

def _chip_budget():
    """(tile VMEM budget bytes, vmem_limit_bytes) -- TPU-generation aware."""
    phys = 128 << 20
    try:
        phys = int(getattr(pltpu.get_tpu_info(), "vmem_capacity_bytes", phys))
    except Exception:
        pass
    kind = ""
    try:
        kind = jax.devices()[0].device_kind.lower()
    except Exception:
        pass
    if phys <= (64 << 20):          # v7x-class: 64 MiB physical per TensorCore
        budget = 40 << 20
    elif "v5" in kind:              # v5e: stay near its 16 MiB scoped default
        budget = 16 << 20
    else:                           # v6e / other 128 MiB parts
        budget = 64 << 20
    limit = max(budget, min(budget + (16 << 20), int(phys * 0.85)))
    return budget, limit


def _num_tensorcores():
    """Best-effort TensorCore count; default 1 (no single-sample tile splitting)."""
    try:
        info = pltpu.get_tpu_info()
        for name in ("num_cores", "num_tensorcores", "tensorcores_per_chip",
                     "cores_per_chip"):
            v = getattr(info, name, None)
            if isinstance(v, int) and v > 0:
                return v
    except Exception:
        pass
    try:
        v = getattr(jax.devices()[0], "num_cores", None)
        if isinstance(v, int) and v > 0:
            return v
    except Exception:
        pass
    return 1


def _pick_tiling(mx, per_col, budget, n_batch, n_cores):
    """Pick lane tile tm (mult of 128) and padded spatial extent m_pad."""
    cap = max(128, (budget // max(per_col, 1)) // 128 * 128)
    if mx % 128 == 0:
        tm = 128
        t = min(cap, mx)
        while t >= 128:                  # largest 128-multiple divisor of mx <= cap
            if mx % t == 0:
                tm = t
                break
            t -= 128
        # Split a single-sample / single-tile launch only when a second
        # TensorCore actually exists (v7x-class megacore).
        if n_cores >= 2 and n_batch * (mx // tm) < 2 and tm % 256 == 0:
            tm //= 2
        return tm, mx                    # no pad, no post-slice copies
    # Unaligned spatial size: pad up to the tile (one pad + one slice copy).
    tm = min(cap, -(-mx // 128) * 128)
    m_pad = -(-mx // tm) * tm
    return tm, m_pad


# ----------------------------- fused Pallas kernel ---------------------------

def _fused_kernel(x_ref, g_ref, ut_ref, wg_ref, wx_ref, bgx_ref, psw_ref, psb_ref,
                  o_ref, *, approx_sigmoid):
    # x_ref  : (1, F_g, TM)  f32  VMEM  fine-scale input tile (channels in sublanes)
    # g_ref  : (1, F_l, Mg)  bf16 VMEM  whole coarse gating tensor for this sample
    # ut_ref : (Mg, TM)      bf16 VMEM  trilinear-upsample operator slab (kron^T)
    # wg_ref : (F_int, F_l)  f32  VMEM  folded W_g conv+BN weight
    # wx_ref : (F_int, F_g)  f32  VMEM  folded W_x conv+BN weight
    # bgx_ref: (F_int, 1)    f32  VMEM  combined bias (bg + bx)
    # psw_ref: (F_int, 1)    f32  VMEM  folded psi conv+BN weight (column)
    # psb_ref: (1,)          f32  SMEM  folded psi bias
    # o_ref  : (1, F_g, TM)  f32  VMEM  output tile (aliased with x in HBM)
    x = x_ref[0]                                                        # (F_g, TM)

    # Trilinear upsample fused as one bf16 MXU matmul, f32 accumulation.
    gu = jnp.dot(g_ref[0], ut_ref[...],
                 preferred_element_type=jnp.float32)                    # (F_l, TM)

    # 1x1x1 convs (+ folded BN) on the MXU; biases commute past the convex
    # (rows-sum-to-1) interpolation so one combined bias is added afterwards.
    p = jnp.dot(wg_ref[...], gu, preferred_element_type=jnp.float32)    # (F_int, TM)
    q = jnp.dot(wx_ref[...], x, preferred_element_type=jnp.float32)     # (F_int, TM)
    a = jnp.maximum(p + q + bgx_ref[...], 0.0)                          # ReLU

    # psi 1x1x1 conv: lane-broadcast multiply + XLU sublane reduce.
    z = jnp.sum(a * psw_ref[...], axis=0, keepdims=True) + psb_ref[0]   # (1, TM)

    # Sigmoid via EUP exp; approx reciprocal (~1e-3 rel. err) is explicitly gated.
    den = 1.0 + jnp.exp(-z)
    psi = pl.reciprocal(den, approx=True) if approx_sigmoid else 1.0 / den

    # The second interpolate of the torch module is an exact identity at x's size.
    o_ref[0] = x * psi                                                  # over F_g


# ----------------------------- module forward --------------------------------

def attention_block(g, x, params, *, approx_sigmoid=True):
    """g: (N, F_l, Dg, Hg, Wg), x: (N, F_g, Dx, Hx, Wx) -> (N, F_g, Dx, Hx, Wx).

    approx_sigmoid=True uses the EUP approximate reciprocal inside the sigmoid
    (small ~1e-3 relative error); pass False for an exact divide.
    """
    n, f_l, dg, hg, wgs = g.shape
    _, f_g, dx, hx, wxs = x.shape

    wg_w, wg_b = fold_conv_bn(params["wg_w"], params["wg_b"], params["wg_bn"])
    wx_w, wx_b = fold_conv_bn(params["wx_w"], params["wx_b"], params["wx_bn"])
    ps_w, ps_b = fold_conv_bn(params["psi_w"], params["psi_b"], params["psi_bn"])
    f_int = wg_w.shape[1]

    mg = dg * hg * wgs
    mx = dx * hx * wxs

    # Separable trilinear operator (align_corners=False), transposed, bf16.
    ud = _axis_matrix(dg, dx)
    uh = _axis_matrix(hg, hx)
    uw = _axis_matrix(wgs, wxs)
    ut = jnp.kron(ud, jnp.kron(uh, uw)).T.astype(jnp.bfloat16)          # (Mg, Mx)

    budget, vmem_limit = _chip_budget()
    n_cores = _num_tensorcores()
    # per-lane-column VMEM bytes: double-buffered x in/out, bf16 Ut slab, temps.
    per_col = 16 * f_g + 4 * mg + 4 * (f_l + 3 * f_int + 4)
    tm, m_pad = _pick_tiling(mx, per_col, budget, n, n_cores)

    x3 = x.reshape(n, f_g, mx)           # NCDHW -> (N, C, M); pure bitcast
    g3 = g.reshape(n, f_l, mg).astype(jnp.bfloat16)
    if m_pad != mx:                      # only when Dx*Hx*Wx is not 128-aligned
        x3 = jnp.pad(x3, ((0, 0), (0, 0), (0, m_pad - mx)))
        ut = jnp.pad(ut, ((0, 0), (0, m_pad - mx)))

    wg_t = wg_w.T                               # (F_int, F_l)
    wx_t = wx_w.T                               # (F_int, F_g)
    bgx = (wg_b + wx_b).reshape(f_int, 1)       # combined bias column
    psw = ps_w.reshape(f_int, 1)                # psi weight column
    smem = pl.BlockSpec(memory_space=pltpu.MemorySpace.SMEM)

    kernel = partial(_fused_kernel, approx_sigmoid=approx_sigmoid)
    out = pl.pallas_call(
        kernel,
        out_shape=jax.ShapeDtypeStruct((n, f_g, m_pad), jnp.float32),
        grid=(m_pad // tm, n),            # batch innermost: Ut DMA'd once per tile
        in_specs=[
            pl.BlockSpec((1, f_g, tm), lambda j, i: (i, 0, j)),    # x tile
            pl.BlockSpec((1, f_l, mg), lambda j, i: (i, 0, 0)),    # whole coarse g
            pl.BlockSpec((mg, tm), lambda j, i: (0, j)),           # Ut slab (bf16)
            pl.BlockSpec((f_int, f_l), lambda j, i: (0, 0)),       # W_g (folded)
            pl.BlockSpec((f_int, f_g), lambda j, i: (0, 0)),       # W_x (folded)
            pl.BlockSpec((f_int, 1), lambda j, i: (0, 0)),         # bg + bx
            pl.BlockSpec((f_int, 1), lambda j, i: (0, 0)),         # psi weight
            smem,                                                  # psi bias
        ],
        out_specs=pl.BlockSpec((1, f_g, tm), lambda j, i: (i, 0, j)),
        input_output_aliases={0: 0},      # true in-place when x is donated
        compiler_params=pltpu.CompilerParams(
            dimension_semantics=("parallel", "parallel"),
            vmem_limit_bytes=int(vmem_limit)),
    )(x3, g3, ut, wg_t, wx_t, bgx, psw, ps_b)

    if m_pad != mx:
        out = out[:, :, :mx]
    return out.reshape(n, f_g, dx, hx, wxs)


# ----------------------------- reference & setup ------------------------------

def reference(g, x, params):
    hi = jax.lax.Precision.HIGHEST
    wg_w, wg_b = fold_conv_bn(params["wg_w"], params["wg_b"], params["wg_bn"])
    wx_w, wx_b = fold_conv_bn(params["wx_w"], params["wx_b"], params["wx_bn"])
    ps_w, ps_b = fold_conv_bn(params["psi_w"], params["psi_b"], params["psi_bn"])
    g_cl = jnp.transpose(g, (0, 2, 3, 4, 1))
    x_cl = jnp.transpose(x, (0, 2, 3, 4, 1))
    g1 = jnp.einsum("ndhwc,ce->ndhwe", g_cl, wg_w, precision=hi) + wg_b.reshape(1, 1, 1, 1, -1)
    x1 = jnp.einsum("ndhwc,ce->ndhwe", x_cl, wx_w, precision=hi) + wx_b.reshape(1, 1, 1, 1, -1)
    phi_g = trilinear_resize(g1, x_cl.shape[1:4])
    a = jnp.maximum(phi_g + x1, 0.0)
    z = jnp.einsum("ndhwc,ce->ndhwe", a, ps_w, precision=hi) + ps_b.reshape(1, 1, 1, 1, -1)
    psi = 1.0 / (1.0 + jnp.exp(-z))
    up_psi = trilinear_resize(psi, x_cl.shape[1:4])
    return jnp.transpose(x_cl * up_psi, (0, 4, 1, 2, 3))


def init_params(key, f_g, f_l, f_int):
    ks = jax.random.split(key, 18)

    def u(k, shape, scale=0.5):
        return jax.random.uniform(k, shape, jnp.float32, -scale, scale)

    def bn(k0, k1, k2, k3, c):
        return dict(
            gamma=1.0 + 0.2 * u(k0, (c,)),
            beta=0.2 * u(k1, (c,)),
            mean=0.2 * u(k2, (c,)),
            var=0.5 + jnp.abs(u(k3, (c,))),
        )

    return {
        # Conv3d weights stored as (Cin, Cout) since kernel_size == 1
        "wg_w": u(ks[0], (f_l, f_int)), "wg_b": u(ks[1], (f_int,)),
        "wg_bn": bn(ks[2], ks[3], ks[4], ks[5], f_int),
        "wx_w": u(ks[6], (f_g, f_int)), "wx_b": u(ks[7], (f_int,)),
        "wx_bn": bn(ks[8], ks[9], ks[10], ks[11], f_int),
        "psi_w": u(ks[12], (f_int, 1)), "psi_b": u(ks[13], (1,)),
        "psi_bn": bn(ks[14], ks[15], ks[16], ks[17], 1),
    }


if __name__ == "__main__":
    key = jax.random.PRNGKey(0)
    kg, kx, kp = jax.random.split(key, 3)

    # Module args: Attention_block(F_g, F_l, F_int).  In forward(), g has F_l
    # channels (coarse signal) and x has F_g channels (fine signal).
    F_g, F_l, F_int = 4, 3, 8
    N = 2
    x = jax.random.normal(kx, (N, F_g, 8, 8, 8), jnp.float32)  # fine scale (NCDHW)
    g = jax.random.normal(kg, (N, F_l, 4, 4, 4), jnp.float32)  # coarse scale (NCDHW)
    params = init_params(kp, F_g, F_l, F_int)

    # Reference BEFORE the donated call (x's buffer is consumed by donation).
    ref = jax.block_until_ready(reference(g, x, params))

    # Donate x so input_output_aliases={0:0} is a real in-place update.
    fwd = jax.jit(attention_block, donate_argnums=(1,))
    out = jax.block_until_ready(fwd(g, x, params))

    assert out.shape == ref.shape, (out.shape, ref.shape)
    max_err = float(jnp.max(jnp.abs(out - ref)))
    assert jnp.allclose(out, ref, atol=2e-2, rtol=2e-2), max_err
    print("KERNEL_OK")
</pallas_src>

<mosaic_0001>
module attributes {stable_mosaic.version = 11 : i64} {
  func.func @_fused_kernel(%arg0: i32, %arg1: i32, %arg2: memref<1x4x512xf32, #tpu.memory_space<vmem>>, %arg3: memref<1x3x64xbf16, #tpu.memory_space<vmem>>, %arg4: memref<64x512xbf16, #tpu.memory_space<vmem>>, %arg5: memref<8x3xf32, #tpu.memory_space<vmem>>, %arg6: memref<8x4xf32, #tpu.memory_space<vmem>>, %arg7: memref<8x1xf32, #tpu.memory_space<vmem>>, %arg8: memref<8x1xf32, #tpu.memory_space<vmem>>, %arg9: memref<1xf32, #tpu.memory_space<smem>>, %arg10: memref<1x4x512xf32, #tpu.memory_space<vmem>>) attributes {dimension_semantics = [#tpu.dimension_semantics<parallel>, #tpu.dimension_semantics<parallel>], iteration_bounds = array<i64: 1, 2>, scalar_prefetch = 0 : i64, scratch_operands = 0 : i64, tpu.core_type = #tpu.core_type<tc>, window_params = [{transform_indices = @transform_0, window_bounds = array<i64: 1, 4, 512>}, {transform_indices = @transform_1, window_bounds = array<i64: 1, 3, 64>}, {transform_indices = @transform_2, window_bounds = array<i64: 64, 512>}, {pipeline_mode = #tpu.pipeline_mode<synchronous>, transform_indices = @transform_3, window_bounds = array<i64: 8, 3>}, {pipeline_mode = #tpu.pipeline_mode<synchronous>, transform_indices = @transform_4, window_bounds = array<i64: 8, 4>}, {pipeline_mode = #tpu.pipeline_mode<synchronous>, transform_indices = @transform_5, window_bounds = array<i64: 8, 1>}, {pipeline_mode = #tpu.pipeline_mode<synchronous>, transform_indices = @transform_6, window_bounds = array<i64: 8, 1>}, {transform_indices = @transform_7, window_bounds = array<i64: 1>}, {transform_indices = @transform_8, window_bounds = array<i64: 1, 4, 512>}]} {
    %c0 = arith.constant 0 : index
    %c0_0 = arith.constant 0 : index
    %c0_1 = arith.constant 0 : index
    %0 = vector.load %arg2[%c0, %c0_0, %c0_1] : memref<1x4x512xf32, #tpu.memory_space<vmem>>, vector<1x4x512xf32>
    %1 = vector.shape_cast %0 : vector<1x4x512xf32> to vector<4x512xf32>
    %c0_2 = arith.constant 0 : index
    %c0_3 = arith.constant 0 : index
    %c0_4 = arith.constant 0 : index
    %2 = vector.load %arg3[%c0_2, %c0_3, %c0_4] : memref<1x3x64xbf16, #tpu.memory_space<vmem>>, vector<1x3x64xbf16>
    %3 = vector.shape_cast %2 : vector<1x3x64xbf16> to vector<3x64xbf16>
    %c0_5 = arith.constant 0 : index
    %c0_6 = arith.constant 0 : index
    %4 = vector.load %arg4[%c0_5, %c0_6] : memref<64x512xbf16, #tpu.memory_space<vmem>>, vector<64x512xbf16>
    %cst = arith.constant dense<0.000000e+00> : vector<3x512xf32>
    %5 = tpu.matmul %3, %4, %cst {dimension_numbers = #tpu.dot_dimension_numbers<[1], [0], [0], [1], [0, 0, 1, 1], [], []>} : vector<3x64xbf16>, vector<64x512xbf16>, vector<3x512xf32> -> vector<3x512xf32>
    %c0_7 = arith.constant 0 : index
    %c0_8 = arith.constant 0 : index
    %6 = vector.load %arg5[%c0_7, %c0_8] : memref<8x3xf32, #tpu.memory_space<vmem>>, vector<8x3xf32>
    %cst_9 = arith.constant dense<0.000000e+00> : vector<8x512xf32>
    %7 = tpu.matmul %6, %5, %cst_9 {dimension_numbers = #tpu.dot_dimension_numbers<[1], [0], [0], [1], [0, 0, 1, 1], [], []>} : vector<8x3xf32>, vector<3x512xf32>, vector<8x512xf32> -> vector<8x512xf32>
    %c0_10 = arith.constant 0 : index
    %c0_11 = arith.constant 0 : index
    %8 = vector.load %arg6[%c0_10, %c0_11] : memref<8x4xf32, #tpu.memory_space<vmem>>, vector<8x4xf32>
    %cst_12 = arith.constant dense<0.000000e+00> : vector<8x512xf32>
    %9 = tpu.matmul %8, %1, %cst_12 {dimension_numbers = #tpu.dot_dimension_numbers<[1], [0], [0], [1], [0, 0, 1, 1], [], []>} : vector<8x4xf32>, vector<4x512xf32>, vector<8x512xf32> -> vector<8x512xf32>
    %10 = arith.addf %7, %9 : vector<8x512xf32>
    %c0_13 = arith.constant 0 : index
    %c0_14 = arith.constant 0 : index
    %11 = vector.load %arg7[%c0_13, %c0_14] : memref<8x1xf32, #tpu.memory_space<vmem>>, vector<8x1xf32>
    %12 = vector.broadcast %11 : vector<8x1xf32> to vector<8x512xf32>
    %13 = arith.addf %10, %12 : vector<8x512xf32>
    %cst_15 = arith.constant 0.000000e+00 : f32
    %14 = vector.broadcast %cst_15 : f32 to vector<8x512xf32>
    %15 = arith.maximumf %13, %14 : vector<8x512xf32>
    %c0_16 = arith.constant 0 : index
    %c0_17 = arith.constant 0 : index
    %16 = vector.load %arg8[%c0_16, %c0_17] : memref<8x1xf32, #tpu.memory_space<vmem>>, vector<8x1xf32>
    %17 = vector.broadcast %16 : vector<8x1xf32> to vector<8x512xf32>
    %18 = arith.mulf %15, %17 : vector<8x512xf32>
    %cst_18 = arith.constant dense<0.000000e+00> : vector<512xf32>
    %19 = vector.multi_reduction <add>, %18, %cst_18 [0] : vector<8x512xf32> to vector<512xf32>
    %20 = vector.shape_cast %19 : vector<512xf32> to vector<1x512xf32>
    %c0_19 = arith.constant 0 : index
    %21 = memref.load %arg9[%c0_19] : memref<1xf32, #tpu.memory_space<smem>>
    %22 = vector.broadcast %21 : f32 to vector<1x512xf32>
    %23 = arith.addf %20, %22 : vector<1x512xf32>
    %cst_20 = arith.constant 0.000000e+00 : f32
    %24 = vector.broadcast %cst_20 : f32 to vector<1x512xf32>
    %25 = arith.subf %24, %23 : vector<1x512xf32>
    %26 = math.exp %25 : vector<1x512xf32>
    %cst_21 = arith.constant 1.000000e+00 : f32
    %27 = vector.broadcast %cst_21 : f32 to vector<1x512xf32>
    %28 = arith.addf %27, %26 : vector<1x512xf32>
    %29 = tpu.reciprocal %28 {approx = true} : vector<1x512xf32> -> vector<1x512xf32>
    %30 = vector.broadcast %29 : vector<1x512xf32> to vector<4x512xf32>
    %31 = arith.mulf %1, %30 : vector<4x512xf32>
    %c0_22 = arith.constant 0 : index
    %c0_23 = arith.constant 0 : index
    %c0_24 = arith.constant 0 : index
    %32 = vector.load %arg10[%c0_22, %c0_23, %c0_24] : memref<1x4x512xf32, #tpu.memory_space<vmem>>, vector<1x4x512xf32>
    %33 = vector.shape_cast %32 : vector<1x4x512xf32> to vector<4x512xf32>
    %34 = vector.shape_cast %31 : vector<4x512xf32> to vector<1x4x512xf32>
    tpu.vector_store %arg10[%c0_22, %c0_23, %c0_24], %34 {strides = array<i32>} : memref<1x4x512xf32, #tpu.memory_space<vmem>>, vector<1x4x512xf32>,
    return
  }
  func.func @transform_0(%arg0: i32, %arg1: i32) -> (i32, i32, i32) {
    %c0_i32 = arith.constant 0 : i32
    %c0_i32_0 = arith.constant 0 : i32
    return %arg1, %c0_i32, %arg0 : i32, i32, i32
  }
  func.func @transform_1(%arg0: i32, %arg1: i32) -> (i32, i32, i32) {
    %c0_i32 = arith.constant 0 : i32
    %c0_i32_0 = arith.constant 0 : i32
    %c0_i32_1 = arith.constant 0 : i32
    return %arg1, %c0_i32, %c0_i32_0 : i32, i32, i32
  }
  func.func @transform_2(%arg0: i32, %arg1: i32) -> (i32, i32) {
    %c0_i32 = arith.constant 0 : i32
    %c0_i32_0 = arith.constant 0 : i32
    return %c0_i32, %arg0 : i32, i32
  }
  func.func @transform_3(%arg0: i32, %arg1: i32) -> (i32, i32) {
    %c0_i32 = arith.constant 0 : i32
    %c0_i32_0 = arith.constant 0 : i32
    %c0_i32_1 = arith.constant 0 : i32
    return %c0_i32, %c0_i32_0 : i32, i32
  }
  func.func @transform_4(%arg0: i32, %arg1: i32) -> (i32, i32) {
    %c0_i32 = arith.constant 0 : i32
    %c0_i32_0 = arith.constant 0 : i32
    %c0_i32_1 = arith.constant 0 : i32
    return %c0_i32, %c0_i32_0 : i32, i32
  }
  func.func @transform_5(%arg0: i32, %arg1: i32) -> (i32, i32) {
    %c0_i32 = arith.constant 0 : i32
    %c0_i32_0 = arith.constant 0 : i32
    %c0_i32_1 = arith.constant 0 : i32
    return %c0_i32, %c0_i32_0 : i32, i32
  }
  func.func @transform_6(%arg0: i32, %arg1: i32) -> (i32, i32) {
    %c0_i32 = arith.constant 0 : i32
    %c0_i32_0 = arith.constant 0 : i32
    %c0_i32_1 = arith.constant 0 : i32
    return %c0_i32, %c0_i32_0 : i32, i32
  }
  func.func @transform_7(%arg0: i32, %arg1: i32) -> i32 {
    %c0_i32 = arith.constant 0 : i32
    %c0_i32_0 = arith.constant 0 : i32
    return %c0_i32 : i32
  }
  func.func @transform_8(%arg0: i32, %arg1: i32) -> (i32, i32, i32) {
    %c0_i32 = arith.constant 0 : i32
    %c0_i32_0 = arith.constant 0 : i32
    return %arg1, %c0_i32, %arg0 : i32, i32, i32
  }
}

</mosaic_0001>

<bundles_post_ra>
// kernel: attention_block.1
= control target key start
LH: loop header
LB: loop body
LE: loop exit
PB: predicated region body
PF: predicated region fallthrough
CT: control target
= control target key end

     0   :  { %s1174_s29 = smov 0   ;;  %s1176_s30 = smov 0   ;;  %s1344_s0 = inlined_call_operand.vmem [shape: f32[2,4,512], index: 0, kind: input, shape index: {}, may-alias: {0,8}]   ;;  %s1345_s1 = inlined_call_operand.vmem [shape: bf16[2,3,64], index: 1, kind: input, shape index: {}]   ;;  %s1346_s2 = inlined_call_operand.vmem [shape: bf16[64,512], index: 2, kind: input, shape index: {}]   ;;  %s1347_s3 = inlined_call_operand.vmem [shape: f32[8,3], index: 3, kind: input, shape index: {}]   ;;  %s1348_s4 = inlined_call_operand.vmem [shape: f32[8,4], index: 4, kind: input, shape index: {}]   ;;  %s1349_s5 = inlined_call_operand.vmem [shape: f32[8,1], index: 5, kind: input, shape index: {}]   ;;  %s1350_s6 = inlined_call_operand.vmem [shape: f32[8,1], index: 6, kind: input, shape index: {}]   ;;  %s1351_s7 = inlined_call_operand.<no memory space> [shape: f32[1], index: 7, kind: input, shape index: {}]   ;;  %s1352_s8 = inlined_call_operand.vmem [shape: f32[2,4,512], index: 8, kind: output, shape index: {}, may-alias: {0,8}]  }
   0x1   :  { %13 = sst [smem:[#allocation2]] %s1351_s7  ;;  %s1178_s9 = smov 0  }
   0x2 LB: > { %s28_s7 = sadd.s32 1, %s1119_s30  ;;  %p949_p0 = scmp.ge.s32.totalorder %s1123_s9, 1  ;;  %s1123_s9 = sphi %s1178_s9, %s19_s9   ;;  %s1119_s30 = sphi %s1176_s30, %s1354_s30   ;;  %s1115_s29 = sphi %s1174_s29, %s1353_s29  }
   0x3   : > { %p29_p1 = scmp.ge.s32.totalorder %s28_s7, 2  ;;  %p304_p2 = scmp.lt.s32.totalorder %s1123_s9, 3 }
   0x5   : > { %s1356_s7 = smov (%p29_p1, %s28_s7), 0  ;;  %p305_p3 = pnand %p949_p0, %p304_p2 }
   0x6   : > { %p356_p4 = scmp.lt.s32.totalorder (!%p305_p3), %s1115_s29, 1  ;;  %s790_s14 = sld [smem:[#allocation2]] (!%p305_p3) }
   0x7   : > { %308 = sbr.rel (%p305_p3) target bundleno = 345 (0x159), region = 52 }
   0xc   : > { %v1013_v0 = vld [vmem:[%s1346_s2 + $0x68] sm:$0xf]  ;;  %v1058_v1 = vld [vmem:[%s1346_s2 + $0x74] sm:$0xf0]  ;;  %v1056_v2 = vld [vmem:[%s1346_s2 + $0x6c] sm:$0xf] }
   0xd   : > { %v1014_v3 = vor.u32 %v1058_v1, %v1013_v0  ;;  %v1015_v4 = vld [vmem:[%s1346_s2 + $0x78] sm:$0xf0]  ;;  %v1055_v5 = vld [vmem:[%s1346_s2 + $0x64] sm:$0xf]  ;;  %v1007_v6 = vld [vmem:[%s1346_s2 + $0x70] sm:$0xf0] }
   0xe   : > { %v1018_v7 = vor.u32 %v1056_v2, %v1015_v4  ;;  %v1010_v8 = vor.u32 %v1055_v5, %v1007_v6  ;;  %v997_v9 = vld [vmem:[%s1346_s2 + $0x48] sm:$0xf]  ;;  %v1054_v10 = vld [vmem:[%s1346_s2 + $0x54] sm:$0xf0]  ;;  %v1052_v11 = vld [vmem:[%s1346_s2 + $0x4c] sm:$0xf] }
   0xf   : > { %519 = vmatpush.bf16.msra.mxu2 %v1014_v3  ;;  %v998_v12 = vor.u32 %v1054_v10, %v997_v9  ;;  %v999_v13 = vld [vmem:[%s1346_s2 + $0x58] sm:$0xf0]  ;;  %v1005_v14 = vld [vmem:[%s1346_s2 + $0x60] sm:$0xf]  ;;  %v1057_v15 = vld [vmem:[%s1346_s2 + $0x6c] sm:$0xf0] }
  0x10   : > { %532 = vmatpush.bf16.msra.mxu3 %v1018_v7  ;;  %506 = vmatpush.bf16.msra.mxu1 %v1010_v8  ;;  %v1002_v16 = vor.u32 %v1052_v11, %v999_v13  ;;  %v1006_v17 = vor.u32 %v1057_v15, %v1005_v14  ;;  %v1051_v18 = vld [vmem:[%s1346_s2 + $0x44] sm:$0xf]  ;;  %v991_v19 = vld [vmem:[%s1346_s2 + $0x50] sm:$0xf0]  ;;  %v981_v20 = vld [vmem:[%s1346_s2 + $0x28] sm:$0xf] }
  0x11   : > { %v994_v21 = vor.u32 %v1051_v18, %v991_v19  ;;  %v1050_v22 = vld [vmem:[%s1346_s2 + $0x34] sm:$0xf0]  ;;  %v1048_v23 = vld [vmem:[%s1346_s2 + $0x2c] sm:$0xf]  ;;  %v983_v24 = vld [vmem:[%s1346_s2 + $0x38] sm:$0xf0] }
  0x12   : > { %493 = vmatpush.bf16.msra.mxu0 %v1006_v17  ;;  %v989_v25 = vld [vmem:[%s1346_s2 + $0x40] sm:$0xf]  ;;  %v1053_v26 = vld [vmem:[%s1346_s2 + $0x4c] sm:$0xf0]  ;;  %v1047_v27 = vld [vmem:[%s1346_s2 + $0x24] sm:$0xf]  ;;  %v982_v28 = vor.u32 %v1050_v22, %v981_v20  ;;  %v986_v33 = vor.u32 %v1048_v23, %v983_v24 }
  0x13   : > { %520 = vmatpush.bf16.msra.mxu2 %v998_v12  ;;  %v990_v29 = vor.u32 %v1053_v26, %v989_v25  ;;  %v975_v30 = vld [vmem:[%s1346_s2 + $0x30] sm:$0xf0]  ;;  %v965_v31 = vld [vmem:[%s1346_s2 + $0x8] sm:$0xf]  ;;  %v1046_v32 = vld [vmem:[%s1346_s2 + $0x14] sm:$0xf0] }
  0x14   : > { %533 = vmatpush.bf16.msra.mxu3 %v1002_v16  ;;  %507 = vmatpush.bf16.msra.mxu1 %v994_v21  ;;  %v978_v34 = vor.u32 %v1047_v27, %v975_v30  ;;  %v1044_v35 = vld [vmem:[%s1346_s2 + $0xc] sm:$0xf]  ;;  %v967_v36 = vld [vmem:[%s1346_s2 + $0x18] sm:$0xf0]  ;;  %v973_v37 = vld [vmem:[%s1346_s2 + $0x20] sm:$0xf]  ;;  %v966_v42 = vor.u32 %v1046_v32, %v965_v31 }
  0x15   : > { %v1049_v38 = vld [vmem:[%s1346_s2 + $0x2c] sm:$0xf0]  ;;  %v1043_v39 = vld [vmem:[%s1346_s2 + $0x4] sm:$0xf]  ;;  %v959_v40 = vld [vmem:[%s1346_s2 + $0x10] sm:$0xf0]  ;;  %v970_v45 = vor.u32 %v1044_v35, %v967_v36 }
  0x16   : > { %494 = vmatpush.bf16.msra.mxu0 %v990_v29  ;;  %v974_v41 = vor.u32 %v1049_v38, %v973_v37  ;;  %v957_v43 = vld [vmem:[%s1346_s2] sm:$0xf]  ;;  %v1045_v44 = vld [vmem:[%s1346_s2 + $0xc] sm:$0xf0]  ;;  %v962_v46 = vor.u32 %v1043_v39, %v959_v40  ;;  %s1358_s29 = smov (!%p356_p4, %s1115_s29), 1  ;;  %vm485_vm0 = vcmask 523264   ;;  %v791_v37 = vstv %s790_s14 }
  0x17   : > { %521 = vmatpush.bf16.msra.mxu2 %v982_v28  ;;  %s1041_s17 = sshll.u32 %s1358_s29, 4  ;;  %s952_s18 = sshll.u32 %s1358_s29, 1  ;;  %v958_v47 = vor.u32 %v1045_v44, %v957_v43  ;;  %vm556_vm1 = vcmask 1043456   ;;  %v542_v55 = vld [vmem:[%s1348_s4] sm:$0xff]  ;;  %vm552_vm2 = vcmask 31744   ;;  %v1125_v57 = vmov 0  }
  0x18   : > { %534 = vmatpush.bf16.msra.mxu3 %v986_v33  ;;  %508 = vmatpush.bf16.msra.mxu1 %v978_v34  ;;  %s363_s21 = scalar_lea.vmem %s1344_s0, %s1041_s17  ;;  %s368_s24 = scalar_lea.vmem %s1345_s1, %s952_s18  ;;  %v742_v56 = vld [vmem:[%s1349_s5] sm:$0xff]  ;;  %vm649_vm3 = vcmask 1042432   ;;  %vm645_vm4 = vcmask 23552  }
  0x19   : > { %v1304_v48 = vld [vmem:[%s363_s21] sm:$0xff]  ;;  %v1306_v49 = vld [vmem:[%s363_s21 + $0x8] sm:$0xff]  ;;  %1084 = vset.pattern.permute.xlu0 %v1125_v57  ;;  %s383_s18 = scalar_lea.vmem %s1352_s8, %s1041_s17 }
  0x1a   : > { %495 = vmatpush.bf16.msra.mxu0 %v974_v41  ;;  %v388_v50 = vld [vmem:[%s368_s24] sm:$0x3]  ;;  %545 = vst [vmem:[#allocation1] ss:$2 sm:$0xff] %v1304_v48  ;;  %745 = vperm.xlu0 %1084, %v742_v56  }
  0x1b   : > { %522 = vmatpush.bf16.msra.mxu2 %v966_v42  ;;  %547 = vst [vmem:[#allocation1 + $0x10] ss:$2 sm:$0xff] %v1306_v49  ;;  %v756_v58 = vld [vmem:[%s1350_s6] sm:$0xff] }
  0x1c   : > { %535 = vmatpush.bf16.msra.mxu3 %v970_v45  ;;  %509 = vmatpush.bf16.msra.mxu1 %v962_v46  ;;  %v541_v59 = vld [vmem:[%s1347_s3] sm:$0xff] }
  0x1e   : > { %1021 = vmatmul.msk.bf16.vlgmr.msra.gmra.mxu2 %vm485_vm0, %v388_v50  ;;  %496 = vmatpush.bf16.msra.mxu0 %v958_v47 }
  0x1f   : > { %1022 = vmatmul.msk.bf16.vlgmr.msra.gmra.mxu3 %vm485_vm0, %v388_v50  ;;  %1020 = vmatmul.msk.bf16.vlgmr.msra.gmra.mxu1 %vm485_vm0, %v388_v50 }
  0x21   : > { %1019 = vmatmul.msk.bf16.vlgmr.msra.gmra.mxu0 %vm485_vm0, %v388_v50  ;;  %v549_v51 = vld.sshfl [vmem:[#allocation1 + $0x8] sm:$0xff pattern:$0x75316420]  ;;  %v548_v52 = vld.sshfl [vmem:[#allocation1] sm:$0xff pattern:$0x75316420] }
  0x22   : > { %v551_v53 = vld.sshfl [vmem:[#allocation1 + $0x18] sm:$0xff pattern:$0x75316420]  ;;  %v550_v54 = vld.sshfl [vmem:[#allocation1 + $0x10] sm:$0xff pattern:$0x75316420]  ;;  %1025 = vmatpush.msk.msrb.mxu1 %vm556_vm1, %v549_v51  ;;  %1023 = vmatpush.msk.msrb.mxu0 %vm556_vm1, %v548_v52 }
  0x23   : > { %1029 = vmatpush.msk.msrb.mxu3 %vm556_vm1, %v551_v53  ;;  %1027 = vmatpush.msk.msrb.mxu2 %vm556_vm1, %v550_v54 }
  0x24   : > { %759 = vperm.xlu0 %1084, %v756_v58  }
  0x2e   : > { %1028 = vmatmul.msk.f32.vlgmr.msrb.gmra.mxu2 %vm552_vm2, %v542_v55 }
  0x2f   : > { %1026 = vmatmul.msk.f32.vlgmr.msrb.gmra.mxu1 %vm552_vm2, %v542_v55  ;;  %1030 = vmatmul.msk.f32.vlgmr.msrb.gmra.mxu3 %vm552_vm2, %v542_v55 }
  0x31   : > { %1024 = vmatmul.msk.f32.vlgmr.msrb.gmra.mxu0 %vm552_vm2, %v542_v55 }
  0x8c   : > { %v746_v6 = vpop.permute.xlu0 %745 }
  0x96   : > { %v760_v14 = vpop.permute.xlu0 %759 }
  0x9c   : > { %v511_v60 = vpop.f32.mrf.mxu1 }
  0x9d   : > { %1033 = vmatpush.msk.msra.mxu1 %vm649_vm3, %v511_v60 }
  0x9e   : > { %v498_v61 = vpop.f32.mrf.mxu0  ;;  %1034 = vmatmul.msk.f32.vlgmr.msra.gmra.mxu1 %vm645_vm4, %v541_v59 }
  0x9f   : > { %1031 = vmatpush.msk.msra.mxu0 %vm649_vm3, %v498_v61 }
  0xa0   : > { %1032 = vmatmul.msk.f32.vlgmr.msra.gmra.mxu0 %vm645_vm4, %v541_v59 }
  0xa1   : > { %v524_v62 = vpop.f32.mrf.mxu2 }
  0xa2   : > { %v537_v63 = vpop.f32.mrf.mxu3  ;;  %1035 = vmatpush.msk.msra.mxu2 %vm649_vm3, %v524_v62 }
  0xa3   : > { %1037 = vmatpush.msk.msra.mxu3 %vm649_vm3, %v537_v63  ;;  %1036 = vmatmul.msk.f32.vlgmr.msra.gmra.mxu2 %vm645_vm4, %v541_v59 }
  0xa4   : > { %1038 = vmatmul.msk.f32.vlgmr.msra.gmra.mxu3 %vm645_vm4, %v541_v59  ;;  %v513_v0 = vpop.f32.mrf.mxu1 }
  0xa6   : > { %v500_v1 = vpop.f32.mrf.mxu0 }
  0xa9   : > { %v526_v2 = vpop.f32.mrf.mxu2 }
  0xaa   : > { %v539_v3 = vpop.f32.mrf.mxu3 }
  0xac   : > { %v602_v4 = vpop.f32.mrf.mxu1 }
  0xae   : > { %v582_v5 = vpop.f32.mrf.mxu0 }
  0xb1   : > { %v622_v9 = vpop.f32.mrf.mxu2 }
  0xb2   : > { %v642_v10 = vpop.f32.mrf.mxu3 }
 0x11b   : > { %v699_v7 = vpop.f32.mrf.mxu1 }
 0x11c   : > { %v700_v8 = vadd.f32 %v699_v7, %v602_v4 }
 0x11d   : > { %v679_v11 = vpop.f32.mrf.mxu0 }
 0x11e   : > { %v749_v12 = vadd.f32 %v746_v6, %v700_v8  ;;  %v680_v13 = vadd.f32 %v679_v11, %v582_v5 }
 0x120   : > { %v753_v15 = vmax.f32 %v749_v12, 0.0  ;;  %v748_v16 = vadd.f32 %v746_v6, %v680_v13 }
 0x122   : > { %v752_v17 = vmax.f32 %v748_v16, 0.0  ;;  %v763_v18 = vmul.f32 %v760_v14, %v753_v15 }
 0x124   : > { %v762_v19 = vmul.f32 %v760_v14, %v752_v17  ;;  %v772_v20 = vrot.slane %v763_v18, 4 }
 0x126   : > { %v766_v21 = vrot.slane %v762_v19, 4  ;;  %v773_v22 = vadd.f32 %v772_v20, %v763_v18  ;;  %v719_v23 = vpop.f32.mrf.mxu2 }
 0x127   : > { %v720_v24 = vadd.f32 %v719_v23, %v622_v9  ;;  %v739_v25 = vpop.f32.mrf.mxu3 }
 0x128   : > { %v767_v26 = vadd.f32 %v766_v21, %v762_v19  ;;  %v774_v27 = vrot.slane %v773_v22, 2  ;;  %v740_v28 = vadd.f32 %v739_v25, %v642_v10 }
 0x129   : > { %v750_v29 = vadd.f32 %v746_v6, %v720_v24 }
 0x12a   : > { %v768_v30 = vrot.slane %v767_v26, 2  ;;  %v775_v31 = vadd.f32 %v774_v27, %v773_v22  ;;  %v751_v32 = vadd.f32 %v746_v6, %v740_v28 }
 0x12b   : > { %v754_v33 = vmax.f32 %v750_v29, 0.0 }
 0x12c   : > { %v769_v34 = vadd.f32 %v768_v30, %v767_v26  ;;  %v776_v35 = vrot.slane %v775_v31, 1  ;;  %v755_v36 = vmax.f32 %v751_v32, 0.0 }
 0x12d   : > { %v764_v38 = vmul.f32 %v760_v14, %v754_v33 }
 0x12e   : > { %v770_v39 = vrot.slane %v769_v34, 1  ;;  %v777_v40 = vadd.f32 %v776_v35, %v775_v31  ;;  %v765_v41 = vmul.f32 %v760_v14, %v755_v36 }
 0x12f   : > { %v778_v42 = vrot.slane %v764_v38, 4 }
 0x130   : > { %v771_v43 = vadd.f32 %v770_v39, %v769_v34  ;;  %v793_v44 = vadd.f32 %v791_v37, %v777_v40  ;;  %v784_v45 = vrot.slane %v765_v41, 4 }
 0x131   : > { %v779_v46 = vadd.f32 %v778_v42, %v764_v38 }
 0x132   : > { %v792_v47 = vadd.f32 %v791_v37, %v771_v43  ;;  %v797_v50 = vsub.f32 0.0, %v793_v44  ;;  %v785_v51 = vadd.f32 %v784_v45, %v765_v41 }
 0x133   : > { %v780_v52 = vrot.slane %v779_v46, 2 }
 0x134   : > { %v796_v53 = vsub.f32 0.0, %v792_v47  ;;  %v802_v54 = vmul.f32 1.442695, %v797_v50  ;;  %v786_v55 = vrot.slane %v785_v51, 2 }
 0x135   : > { %v781_v56 = vadd.f32 %v780_v52, %v779_v46 }
 0x136   : > { %v800_v57 = vmul.f32 1.442695, %v796_v53  ;;  %1085 = vpow2.f32 %v802_v54  ;;  %v787_v58 = vadd.f32 %v786_v55, %v785_v51 }
 0x137   : > { %v782_v59 = vrot.slane %v781_v56, 1 }
 0x138   : > { %1087 = vpow2.f32 %v800_v57  ;;  %v788_v60 = vrot.slane %v787_v58, 1 }
 0x139   : > { %v783_v61 = vadd.f32 %v782_v59, %v781_v56 }
 0x13a   : > { %v789_v62 = vadd.f32 %v788_v60, %v787_v58 }
 0x13b   : > { %v794_v63 = vadd.f32 %v791_v37, %v783_v61 }
 0x13c   : > { %v1086_v0 = vpop.eup %1085  ;;  %v795_v1 = vadd.f32 %v791_v37, %v789_v62 }
 0x13d   : > { %v809_v2 = vadd.f32 1.0, %v1086_v0  ;;  %v798_v3 = vsub.f32 0.0, %v794_v63 }
 0x13e   : > { %v1088_v4 = vpop.eup %1087  ;;  %v799_v5 = vsub.f32 0.0, %v795_v1 }
 0x13f   : > { %v808_v6 = vadd.f32 1.0, %v1088_v4  ;;  %1089 = vrcp.f32 %v809_v2  ;;  %v804_v7 = vmul.f32 1.442695, %v798_v3 }
 0x140   : > { %v806_v8 = vmul.f32 1.442695, %v799_v5 }
 0x141   : > { %1091 = vrcp.f32 %v808_v6 }
 0x142   : > { %1093 = vpow2.f32 %v804_v7 }
 0x143   : > { %1095 = vpow2.f32 %v806_v8 }
 0x145   : > { %v1090_v9 = vpop.eup %1089 }
 0x146   : > { %v820_v10 = vrot.slane %v1090_v9, 4 }
 0x147   : > { %v1092_v11 = vpop.eup %1091 }
 0x148   : > { %v1094_v12 = vpop.eup %1093  ;;  %v822_v13 = vsel %vm556_vm1, %v1092_v11, %v820_v10 }
 0x149   : > { %v1096_v14 = vpop.eup %1095  ;;  %v826_v15 = vmul.f32 %v822_v13, %v1304_v48  ;;  %v810_v16 = vadd.f32 1.0, %v1094_v12 }
 0x14a   : > { %v811_v17 = vadd.f32 1.0, %v1096_v14 }
 0x14b   : > { %828 = vst [vmem:[%s383_s18] sm:$0xff] %v826_v15 }
 0x14c   : > { %1097 = vrcp.f32 %v811_v17 }
 0x14d   : > { %1099 = vrcp.f32 %v810_v16 }
 0x152   : > { %v1098_v18 = vpop.eup %1097 }
 0x153   : > { %v821_v19 = vrot.slane %v1098_v18, 4  ;;  %v1100_v20 = vpop.eup %1099 }
 0x155   : > { %v823_v21 = vsel %vm556_vm1, %v1100_v20, %v821_v19 }
 0x156   : > { %v827_v22 = vmul.f32 %v823_v21, %v1306_v49 }
 0x158   : > { %829 = vst [vmem:[%s383_s18 + $0x8] sm:$0xff] %v827_v22 }
 0x159 PF: > { %s19_s9 = sadd.s32 1, %s1123_s9   ;;  %s1353_s29 = smov %s1119_s30 }
 0x15a   : > { %p16_p5 = scmp.ge.s32.totalorder %s19_s9, 4   ;;  %s1354_s30 = smov %s1356_s7 }
 0x15c   :  { %18 = sbr.rel (!%p16_p5) target bundleno = 2 (0x2), region = 89 }

</bundles_post_ra>
